<compile_context>
chip_gen: v7x
topology: tpu7x:2x2x1
jax: 0.10.0
libtpu: 0.0.40
codegen_flags: <defaults>
</compile_context>

<pallas_src>
import functools

import jax
import jax.numpy as jnp
from jax.experimental import pallas as pl
from jax.experimental.pallas import tpu as pltpu


def _round_up(x, m):
    return (x + m - 1) // m * m


def _ws_conv2d_kernel(x_ref, w_ref, b_ref, o_ref, patch_ref, *,
                      taps, cin_p, b_imgs, l_in, l_out):
    """One block of B images per grid point, weight-stationary.

    x_ref     : (1, Cin_p, B*l_in)   zero-padded images, channel-first, spatially
                                     flattened; image b occupies lanes [b*l_in, (b+1)*l_in)
    w_ref     : (Cout, K)            WS-scaled weights, K = KH*KW*Cin_p, cols ordered (kh, kw, cin)
    b_ref     : (Cout, 1)
    o_ref     : (1, Cout, B*l_out)   dense stride-1 conv on the padded grid, flat (h*Wp + w),
                                     lane-padded to a multiple of 128 (unmasked stores)
    patch_ref : (K, B*l_out)         VMEM scratch holding the im2col matrix
    """
    x = x_ref[0]                                              # (Cin_p, B*l_in)

    # im2col into VMEM scratch: tap (kh, kw) of image b is the lane window
    # x[:, b*l_in + d : ... + l_out] with d = kh*Wp + kw.  Short unrolled loop of
    # plain stores; no big concatenated register value is ever materialized.
    for b in range(b_imgs):
        for k, d in enumerate(taps):
            s = b * l_in + d
            patch_ref[k * cin_p:(k + 1) * cin_p, b * l_out:(b + 1) * l_out] = \
                x[:, s:s + l_out]

    # Single MXU matmul over all B images; lane-dense f32 accumulator.
    acc = jnp.dot(w_ref[...], patch_ref[...],
                  preferred_element_type=jnp.float32)         # (Cout, B*l_out)
    acc = acc + b_ref[...]                                    # (Cout, 1) broadcasts over lanes
    o_ref[0] = acc.astype(o_ref.dtype)


def _pick_batch_block(n):
    """Images per grid step: whole batch on 1-TC chips; ~half on v7x (2 TCs)."""
    try:
        kind = jax.devices()[0].device_kind.lower()
    except Exception:
        kind = ""
    if n >= 2 and "v7" in kind:
        return (n + 1) // 2
    return max(n, 1)


def ws_conv2d(x_nchw, weight, bias, *, kernel_size=3, stride=1, padding=1):
    """Weight-scaled conv2d.  x_nchw: (N, Cin, H, W), weight: (Cout, Cin, KH, KW),
    bias: (Cout,).  Returns (N, Cout, Ho, Wo) like the PyTorch module."""
    N, Cin, H, W = x_nchw.shape
    Cout, Cin_w, KH, KW = weight.shape
    assert Cin_w == Cin and KH == kernel_size and KW == kernel_size
    scale = (2.0 / (Cin * kernel_size ** 2)) ** 0.5

    Hp, Wp = H + 2 * padding, W + 2 * padding
    Ho = (Hp - KH) // stride + 1
    Wo = (Wp - KW) // stride + 1

    # Dense stride-1 result on the padded grid; wrapper subsamples for stride>1.
    # TODO(synk): for stride>1, emit only every stride-th output row inside the
    # kernel instead of overcomputing by stride**2 and subsampling here.
    Ho1 = Hp - KH + 1                       # stride-1 output rows
    Lout = Ho1 * Wp                         # valid flat output length per image
    taps = tuple(kh * Wp + kw for kh in range(KH) for kw in range(KW))
    Cin_p = _round_up(Cin, 8)               # full sublane tile of input channels
    K = KH * KW * Cin_p
    Lout_p = _round_up(Lout, 128)           # lane-dense output length (288 -> 384)
    Lin_p = _round_up(taps[-1] + Lout_p, 128)          # every tap window stays in-bounds
    Lin_p = max(Lin_p, _round_up(Hp * Wp, 128))

    B = _pick_batch_block(N)                # images per grid step
    NB = -(-N // B)                         # grid steps
    N_pad = NB * B

    # --- wrapper glue: pad / reshape / lane-group (tiny XLA layout ops) --------
    x_pad = jnp.pad(x_nchw, ((0, N_pad - N), (0, Cin_p - Cin),
                             (padding, padding), (padding, padding)))
    x_flat = x_pad.reshape(N_pad, Cin_p, Hp * Wp)
    x_flat = jnp.pad(x_flat, ((0, 0), (0, 0), (0, Lin_p - Hp * Wp)))
    # group B images per block, concatenated along the lane axis
    x_blk = (x_flat.reshape(NB, B, Cin_p, Lin_p)
                   .transpose(0, 2, 1, 3)
                   .reshape(NB, Cin_p, B * Lin_p))

    # weights -> (Cout, K), cols ordered (kh, kw, cin); fold the WS scale in once
    w_pad = jnp.pad(weight, ((0, 0), (0, Cin_p - Cin), (0, 0), (0, 0)))
    w_mat = jnp.transpose(w_pad, (0, 2, 3, 1)).reshape(Cout, K) * scale
    b_col = bias.reshape(Cout, 1)

    kernel = functools.partial(_ws_conv2d_kernel, taps=taps, cin_p=Cin_p,
                               b_imgs=B, l_in=Lin_p, l_out=Lout_p)

    itemsize = x_nchw.dtype.itemsize
    cost = pl.CostEstimate(
        flops=int(2 * N_pad * Cout * K * Lout_p),
        bytes_accessed=int(itemsize * (x_blk.size + NB * (w_mat.size + b_col.size)
                                       + N_pad * Cout * Lout_p)),
        transcendentals=0)

    block_bytes = 4 * (Cin_p * B * Lin_p + Cout * B * Lout_p + K * B * Lout_p
                       + Cout * K + Cout)
    # NOTE(v7x): only 64 MiB physical VMEM — production-sized tiles must keep
    # 2*(in+out) blocks plus the KH*KW-times-larger im2col scratch under ~48 MiB.
    vmem_limit = int(max(16 * 1024 * 1024, min(48 * 1024 * 1024, 8 * block_bytes)))

    out_blk = pl.pallas_call(
        kernel,
        out_shape=jax.ShapeDtypeStruct((NB, Cout, B * Lout_p), x_nchw.dtype),
        grid=(NB,),
        in_specs=[
            pl.BlockSpec((1, Cin_p, B * Lin_p), lambda n: (n, 0, 0)),
            pl.BlockSpec((Cout, K), lambda n: (0, 0)),
            pl.BlockSpec((Cout, 1), lambda n: (0, 0)),
        ],
        out_specs=pl.BlockSpec((1, Cout, B * Lout_p), lambda n: (n, 0, 0)),
        scratch_shapes=[pltpu.VMEM((K, B * Lout_p), x_nchw.dtype)],
        compiler_params=pltpu.CompilerParams(
            dimension_semantics=("parallel",),
            vmem_limit_bytes=vmem_limit),
        cost_estimate=cost,
    )(x_blk, w_mat, b_col)

    # ungroup the lane-concatenated images, crop the lane padding, un-flatten,
    # apply stride, then crop the spatial edges (crop AFTER the stride subsample:
    # the right-edge columns w > Wp-KW of each emitted row are garbage by design).
    out_full = (out_blk.reshape(NB, Cout, B, Lout_p)
                       .transpose(0, 2, 1, 3)
                       .reshape(N_pad, Cout, Lout_p)[:N, :, :Lout]
                       .reshape(N, Cout, Ho1, Wp))
    return out_full[:, :, ::stride, ::stride][:, :, :Ho, :Wo]


def _reference(x_nchw, weight, bias, *, kernel_size=3, stride=1, padding=1):
    """Pure-JAX reference mirroring the PyTorch forward."""
    Cin = x_nchw.shape[1]
    scale = (2.0 / (Cin * kernel_size ** 2)) ** 0.5
    y = jax.lax.conv_general_dilated(
        x_nchw * scale, weight,
        window_strides=(stride, stride),
        padding=((padding, padding), (padding, padding)),
        dimension_numbers=("NCHW", "OIHW", "NCHW"),
    )
    return y + bias.reshape(1, -1, 1, 1)


if __name__ == "__main__":
    # module config: in_channels=4, out_channels=8, kernel=3, stride=1, padding=1
    N, Cin, Cout, H, W, K = 2, 4, 8, 16, 16, 3

    key = jax.random.PRNGKey(0)
    kx, kw = jax.random.split(key)
    x = jax.random.normal(kx, (N, Cin, H, W), dtype=jnp.float32)
    weight = jax.random.normal(kw, (Cout, Cin, K, K), dtype=jnp.float32)  # nn.init.normal_
    bias = jnp.zeros((Cout,), dtype=jnp.float32)                          # nn.init.zeros_

    out = ws_conv2d(x, weight, bias, kernel_size=K, stride=1, padding=1)
    out = jax.block_until_ready(out)

    ref = _reference(x, weight, bias, kernel_size=K, stride=1, padding=1)
    assert out.shape == (N, Cout, H, W), out.shape
    err = float(jnp.max(jnp.abs(out - ref)))
    assert jnp.allclose(out, ref, atol=1e-4, rtol=1e-4), err

    print("KERNEL_OK")
</pallas_src>

<mosaic_0001>
module attributes {stable_mosaic.version = 11 : i64} {
  func.func @_ws_conv2d_kernel(%arg0: i32, %arg1: memref<1x8x1024xf32, #tpu.memory_space<vmem>>, %arg2: memref<8x72xf32, #tpu.memory_space<vmem>>, %arg3: memref<8x1xf32, #tpu.memory_space<vmem>>, %arg4: memref<1x8x768xf32, #tpu.memory_space<vmem>>, %arg5: memref<72x768xf32, #tpu.memory_space<vmem>>) attributes {dimension_semantics = [#tpu.dimension_semantics<parallel>], iteration_bounds = array<i64: 1>, scalar_prefetch = 0 : i64, scratch_operands = 1 : i64, tpu.core_type = #tpu.core_type<tc>, window_params = [{transform_indices = @transform_0, window_bounds = array<i64: 1, 8, 1024>}, {pipeline_mode = #tpu.pipeline_mode<synchronous>, transform_indices = @transform_1, window_bounds = array<i64: 8, 72>}, {pipeline_mode = #tpu.pipeline_mode<synchronous>, transform_indices = @transform_2, window_bounds = array<i64: 8, 1>}, {transform_indices = @transform_3, window_bounds = array<i64: 1, 8, 768>}]} {
    %c0 = arith.constant 0 : index
    %c0_0 = arith.constant 0 : index
    %c0_1 = arith.constant 0 : index
    %0 = vector.load %arg1[%c0, %c0_0, %c0_1] : memref<1x8x1024xf32, #tpu.memory_space<vmem>>, vector<1x8x1024xf32>
    %1 = vector.shape_cast %0 : vector<1x8x1024xf32> to vector<8x1024xf32>
    %2 = vector.extract_strided_slice %1 {offsets = [0, 0], sizes = [8, 384], strides = [1, 1]} : vector<8x1024xf32> to vector<8x384xf32>
    %c0_2 = arith.constant 0 : index
    %c0_3 = arith.constant 0 : index
    %3 = vector.load %arg5[%c0_2, %c0_3] : memref<72x768xf32, #tpu.memory_space<vmem>>, vector<8x384xf32>
    tpu.vector_store %arg5[%c0_2, %c0_3], %2 {strides = array<i32>} : memref<72x768xf32, #tpu.memory_space<vmem>>, vector<8x384xf32>,
    %4 = vector.extract_strided_slice %1 {offsets = [0, 1], sizes = [8, 384], strides = [1, 1]} : vector<8x1024xf32> to vector<8x384xf32>
    %c8 = arith.constant 8 : index
    %c0_4 = arith.constant 0 : index
    %5 = vector.load %arg5[%c8, %c0_4] : memref<72x768xf32, #tpu.memory_space<vmem>>, vector<8x384xf32>
    tpu.vector_store %arg5[%c8, %c0_4], %4 {strides = array<i32>} : memref<72x768xf32, #tpu.memory_space<vmem>>, vector<8x384xf32>,
    %6 = vector.extract_strided_slice %1 {offsets = [0, 2], sizes = [8, 384], strides = [1, 1]} : vector<8x1024xf32> to vector<8x384xf32>
    %c16 = arith.constant 16 : index
    %c0_5 = arith.constant 0 : index
    %7 = vector.load %arg5[%c16, %c0_5] : memref<72x768xf32, #tpu.memory_space<vmem>>, vector<8x384xf32>
    tpu.vector_store %arg5[%c16, %c0_5], %6 {strides = array<i32>} : memref<72x768xf32, #tpu.memory_space<vmem>>, vector<8x384xf32>,
    %8 = vector.extract_strided_slice %1 {offsets = [0, 18], sizes = [8, 384], strides = [1, 1]} : vector<8x1024xf32> to vector<8x384xf32>
    %c24 = arith.constant 24 : index
    %c0_6 = arith.constant 0 : index
    %9 = vector.load %arg5[%c24, %c0_6] : memref<72x768xf32, #tpu.memory_space<vmem>>, vector<8x384xf32>
    tpu.vector_store %arg5[%c24, %c0_6], %8 {strides = array<i32>} : memref<72x768xf32, #tpu.memory_space<vmem>>, vector<8x384xf32>,
    %10 = vector.extract_strided_slice %1 {offsets = [0, 19], sizes = [8, 384], strides = [1, 1]} : vector<8x1024xf32> to vector<8x384xf32>
    %c32 = arith.constant 32 : index
    %c0_7 = arith.constant 0 : index
    %11 = vector.load %arg5[%c32, %c0_7] : memref<72x768xf32, #tpu.memory_space<vmem>>, vector<8x384xf32>
    tpu.vector_store %arg5[%c32, %c0_7], %10 {strides = array<i32>} : memref<72x768xf32, #tpu.memory_space<vmem>>, vector<8x384xf32>,
    %12 = vector.extract_strided_slice %1 {offsets = [0, 20], sizes = [8, 384], strides = [1, 1]} : vector<8x1024xf32> to vector<8x384xf32>
    %c40 = arith.constant 40 : index
    %c0_8 = arith.constant 0 : index
    %13 = vector.load %arg5[%c40, %c0_8] : memref<72x768xf32, #tpu.memory_space<vmem>>, vector<8x384xf32>
    tpu.vector_store %arg5[%c40, %c0_8], %12 {strides = array<i32>} : memref<72x768xf32, #tpu.memory_space<vmem>>, vector<8x384xf32>,
    %14 = vector.extract_strided_slice %1 {offsets = [0, 36], sizes = [8, 384], strides = [1, 1]} : vector<8x1024xf32> to vector<8x384xf32>
    %c48 = arith.constant 48 : index
    %c0_9 = arith.constant 0 : index
    %15 = vector.load %arg5[%c48, %c0_9] : memref<72x768xf32, #tpu.memory_space<vmem>>, vector<8x384xf32>
    tpu.vector_store %arg5[%c48, %c0_9], %14 {strides = array<i32>} : memref<72x768xf32, #tpu.memory_space<vmem>>, vector<8x384xf32>,
    %16 = vector.extract_strided_slice %1 {offsets = [0, 37], sizes = [8, 384], strides = [1, 1]} : vector<8x1024xf32> to vector<8x384xf32>
    %c56 = arith.constant 56 : index
    %c0_10 = arith.constant 0 : index
    %17 = vector.load %arg5[%c56, %c0_10] : memref<72x768xf32, #tpu.memory_space<vmem>>, vector<8x384xf32>
    tpu.vector_store %arg5[%c56, %c0_10], %16 {strides = array<i32>} : memref<72x768xf32, #tpu.memory_space<vmem>>, vector<8x384xf32>,
    %18 = vector.extract_strided_slice %1 {offsets = [0, 38], sizes = [8, 384], strides = [1, 1]} : vector<8x1024xf32> to vector<8x384xf32>
    %c64 = arith.constant 64 : index
    %c0_11 = arith.constant 0 : index
    %19 = vector.load %arg5[%c64, %c0_11] : memref<72x768xf32, #tpu.memory_space<vmem>>, vector<8x384xf32>
    tpu.vector_store %arg5[%c64, %c0_11], %18 {strides = array<i32>} : memref<72x768xf32, #tpu.memory_space<vmem>>, vector<8x384xf32>,
    %20 = vector.extract_strided_slice %1 {offsets = [0, 512], sizes = [8, 384], strides = [1, 1]} : vector<8x1024xf32> to vector<8x384xf32>
    %c0_12 = arith.constant 0 : index
    %c384 = arith.constant 384 : index
    %21 = vector.load %arg5[%c0_12, %c384] : memref<72x768xf32, #tpu.memory_space<vmem>>, vector<8x384xf32>
    tpu.vector_store %arg5[%c0_12, %c384], %20 {strides = array<i32>} : memref<72x768xf32, #tpu.memory_space<vmem>>, vector<8x384xf32>,
    %22 = vector.extract_strided_slice %1 {offsets = [0, 513], sizes = [8, 384], strides = [1, 1]} : vector<8x1024xf32> to vector<8x384xf32>
    %c8_13 = arith.constant 8 : index
    %c384_14 = arith.constant 384 : index
    %23 = vector.load %arg5[%c8_13, %c384_14] : memref<72x768xf32, #tpu.memory_space<vmem>>, vector<8x384xf32>
    tpu.vector_store %arg5[%c8_13, %c384_14], %22 {strides = array<i32>} : memref<72x768xf32, #tpu.memory_space<vmem>>, vector<8x384xf32>,
    %24 = vector.extract_strided_slice %1 {offsets = [0, 514], sizes = [8, 384], strides = [1, 1]} : vector<8x1024xf32> to vector<8x384xf32>
    %c16_15 = arith.constant 16 : index
    %c384_16 = arith.constant 384 : index
    %25 = vector.load %arg5[%c16_15, %c384_16] : memref<72x768xf32, #tpu.memory_space<vmem>>, vector<8x384xf32>
    tpu.vector_store %arg5[%c16_15, %c384_16], %24 {strides = array<i32>} : memref<72x768xf32, #tpu.memory_space<vmem>>, vector<8x384xf32>,
    %26 = vector.extract_strided_slice %1 {offsets = [0, 530], sizes = [8, 384], strides = [1, 1]} : vector<8x1024xf32> to vector<8x384xf32>
    %c24_17 = arith.constant 24 : index
    %c384_18 = arith.constant 384 : index
    %27 = vector.load %arg5[%c24_17, %c384_18] : memref<72x768xf32, #tpu.memory_space<vmem>>, vector<8x384xf32>
    tpu.vector_store %arg5[%c24_17, %c384_18], %26 {strides = array<i32>} : memref<72x768xf32, #tpu.memory_space<vmem>>, vector<8x384xf32>,
    %28 = vector.extract_strided_slice %1 {offsets = [0, 531], sizes = [8, 384], strides = [1, 1]} : vector<8x1024xf32> to vector<8x384xf32>
    %c32_19 = arith.constant 32 : index
    %c384_20 = arith.constant 384 : index
    %29 = vector.load %arg5[%c32_19, %c384_20] : memref<72x768xf32, #tpu.memory_space<vmem>>, vector<8x384xf32>
    tpu.vector_store %arg5[%c32_19, %c384_20], %28 {strides = array<i32>} : memref<72x768xf32, #tpu.memory_space<vmem>>, vector<8x384xf32>,
    %30 = vector.extract_strided_slice %1 {offsets = [0, 532], sizes = [8, 384], strides = [1, 1]} : vector<8x1024xf32> to vector<8x384xf32>
    %c40_21 = arith.constant 40 : index
    %c384_22 = arith.constant 384 : index
    %31 = vector.load %arg5[%c40_21, %c384_22] : memref<72x768xf32, #tpu.memory_space<vmem>>, vector<8x384xf32>
    tpu.vector_store %arg5[%c40_21, %c384_22], %30 {strides = array<i32>} : memref<72x768xf32, #tpu.memory_space<vmem>>, vector<8x384xf32>,
    %32 = vector.extract_strided_slice %1 {offsets = [0, 548], sizes = [8, 384], strides = [1, 1]} : vector<8x1024xf32> to vector<8x384xf32>
    %c48_23 = arith.constant 48 : index
    %c384_24 = arith.constant 384 : index
    %33 = vector.load %arg5[%c48_23, %c384_24] : memref<72x768xf32, #tpu.memory_space<vmem>>, vector<8x384xf32>
    tpu.vector_store %arg5[%c48_23, %c384_24], %32 {strides = array<i32>} : memref<72x768xf32, #tpu.memory_space<vmem>>, vector<8x384xf32>,
    %34 = vector.extract_strided_slice %1 {offsets = [0, 549], sizes = [8, 384], strides = [1, 1]} : vector<8x1024xf32> to vector<8x384xf32>
    %c56_25 = arith.constant 56 : index
    %c384_26 = arith.constant 384 : index
    %35 = vector.load %arg5[%c56_25, %c384_26] : memref<72x768xf32, #tpu.memory_space<vmem>>, vector<8x384xf32>
    tpu.vector_store %arg5[%c56_25, %c384_26], %34 {strides = array<i32>} : memref<72x768xf32, #tpu.memory_space<vmem>>, vector<8x384xf32>,
    %36 = vector.extract_strided_slice %1 {offsets = [0, 550], sizes = [8, 384], strides = [1, 1]} : vector<8x1024xf32> to vector<8x384xf32>
    %c64_27 = arith.constant 64 : index
    %c384_28 = arith.constant 384 : index
    %37 = vector.load %arg5[%c64_27, %c384_28] : memref<72x768xf32, #tpu.memory_space<vmem>>, vector<8x384xf32>
    tpu.vector_store %arg5[%c64_27, %c384_28], %36 {strides = array<i32>} : memref<72x768xf32, #tpu.memory_space<vmem>>, vector<8x384xf32>,
    %c0_29 = arith.constant 0 : index
    %c0_30 = arith.constant 0 : index
    %38 = vector.load %arg2[%c0_29, %c0_30] : memref<8x72xf32, #tpu.memory_space<vmem>>, vector<8x72xf32>
    %c0_31 = arith.constant 0 : index
    %c0_32 = arith.constant 0 : index
    %39 = vector.load %arg5[%c0_31, %c0_32] : memref<72x768xf32, #tpu.memory_space<vmem>>, vector<72x768xf32>
    %cst = arith.constant dense<0.000000e+00> : vector<8x768xf32>
    %40 = tpu.matmul %38, %39, %cst {dimension_numbers = #tpu.dot_dimension_numbers<[1], [0], [0], [1], [0, 0, 1, 1], [], []>} : vector<8x72xf32>, vector<72x768xf32>, vector<8x768xf32> -> vector<8x768xf32>
    %c0_33 = arith.constant 0 : index
    %c0_34 = arith.constant 0 : index
    %41 = vector.load %arg3[%c0_33, %c0_34] : memref<8x1xf32, #tpu.memory_space<vmem>>, vector<8x1xf32>
    %42 = vector.broadcast %41 : vector<8x1xf32> to vector<8x768xf32>
    %43 = arith.addf %40, %42 : vector<8x768xf32>
    %c0_35 = arith.constant 0 : index
    %c0_36 = arith.constant 0 : index
    %c0_37 = arith.constant 0 : index
    %44 = vector.load %arg4[%c0_35, %c0_36, %c0_37] : memref<1x8x768xf32, #tpu.memory_space<vmem>>, vector<1x8x768xf32>
    %45 = vector.shape_cast %44 : vector<1x8x768xf32> to vector<8x768xf32>
    %46 = vector.shape_cast %43 : vector<8x768xf32> to vector<1x8x768xf32>
    tpu.vector_store %arg4[%c0_35, %c0_36, %c0_37], %46 {strides = array<i32>} : memref<1x8x768xf32, #tpu.memory_space<vmem>>, vector<1x8x768xf32>,
    return
  }
  func.func @transform_0(%arg0: i32) -> (i32, i32, i32) {
    %c0_i32 = arith.constant 0 : i32
    %c0_i32_0 = arith.constant 0 : i32
    %c0_i32_1 = arith.constant 0 : i32
    return %arg0, %c0_i32, %c0_i32_0 : i32, i32, i32
  }
  func.func @transform_1(%arg0: i32) -> (i32, i32) {
    %c0_i32 = arith.constant 0 : i32
    %c0_i32_0 = arith.constant 0 : i32
    %c0_i32_1 = arith.constant 0 : i32
    return %c0_i32, %c0_i32_0 : i32, i32
  }
  func.func @transform_2(%arg0: i32) -> (i32, i32) {
    %c0_i32 = arith.constant 0 : i32
    %c0_i32_0 = arith.constant 0 : i32
    %c0_i32_1 = arith.constant 0 : i32
    return %c0_i32, %c0_i32_0 : i32, i32
  }
  func.func @transform_3(%arg0: i32) -> (i32, i32, i32) {
    %c0_i32 = arith.constant 0 : i32
    %c0_i32_0 = arith.constant 0 : i32
    %c0_i32_1 = arith.constant 0 : i32
    return %arg0, %c0_i32, %c0_i32_0 : i32, i32, i32
  }
}

</mosaic_0001>

<bundles_post_ra>
// kernel: tpu_custom_call.1
= control target key start
LH: loop header
LB: loop body
LE: loop exit
PB: predicated region body
PF: predicated region fallthrough
CT: control target
= control target key end

     0   :  { %8 = vsyncpa [#allocation4], 0  ;;  %s1152_s0 = inlined_call_operand.hbm [shape: f32[1,8,1024], index: 0, kind: input, shape index: {}]   ;;  %s1153_s1 = inlined_call_operand.vmem [shape: f32[8,72], index: 1, kind: input, shape index: {}]   ;;  %s1154_s2 = inlined_call_operand.vmem [shape: f32[8,1], index: 2, kind: input, shape index: {}]   ;;  %s1155_s3 = inlined_call_operand.hbm [shape: f32[1,8,768], index: 3, kind: output, shape index: {}]  }
   0x1   :  { %9 = vsyncpa [#allocation5], 0  ;;  %s876_s12 = smov [#allocation3]   ;;  %s828_s16 = scalar_lea.hbm %s1152_s0, 1024 }
   0x2   :  { %s16_s13 = sshll.u32 %s876_s12, 4  ;;  %p829_p0 = scmp.ne.s32.totalorder %s1152_s0, %s828_s16  ;;  %s17_s13 = int_to_ptr.vmem [resolvable:$true] %s16_s13 }
   0x3   :  { %p832_p1 = scmp.lt.u32.totalorder %s828_s16, %s1152_s0 }
   0x5   :  { %p834_p2 = pnand %p832_p1, %p829_p0 }
   0x7   :  { %837 = shalt.err (!%p834_p2)
}
   0x8   :  { %s838_s21 = scalar_lea.vmem %s17_s13, 1024  ;;  %p843_p4 = scmp.lt.s32.totalorder %s17_s13, %s17_s13 }
   0x9   :  { %p839_p3 = scmp.ne.s32.totalorder %s17_s13, %s838_s21  ;;  %p844_p5 = scmp.lt.s32.totalorder %s838_s21, %s838_s21 }
   0xb   :  { %p845_p6 = por %p844_p5, %p843_p4 }
   0xd   :  { %p846_p7 = pnand %p845_p6, %p839_p3 }
   0xf   :  { %849 = shalt.err (!%p846_p7)
}
  0x10   :  { %19 = dma.hbm_to_vmem [thread:$0]  %s1152_s0, 1024, %s17_s13, [#allocation4]  }
  0x11   :  { %872 = dma.done.wait [#allocation4], 1024  }
  0x12   :  { %873 = vsyncadd [#allocation4], 4294966272  ;;  %v920_v0 = vld [vmem:[#allocation3 + $0x8] sm:$0xff]  ;;  %v922_v1 = vld [vmem:[#allocation3 + $0x10] sm:$0xff]  ;;  %s877_s24 = smov 126   ;;  %s878_s25 = smov 127  }
  0x13   :  { %v924_v2 = vld [vmem:[#allocation3] sm:$0xff]  ;;  %v701_v3 = vpack.i.bf16 %v922_v1, %v920_v0  ;;  %s879_s0 = smov 110   ;;  %s880_s26 = smov 108   ;;  %v30_v6 = vld [vmem:[#allocation3 + $0x18] sm:$0xff]  ;;  %v947_v8 = vld [vmem:[#allocation3 + $0x28] sm:$0xff]  ;;  %v884_v10 = vmov 0.0  }
  0x14   :  { %v928_v4 = vld [vmem:[#allocation3 + $0x20] sm:$0xff]  ;;  %s881_s27 = smov 109   ;;  %s882_s28 = smov 91   ;;  %v34_v7 = vld [vmem:[#allocation3 + $0x38] sm:$0xff]  ;;  %v949_v9 = vld [vmem:[#allocation3 + $0x30] sm:$0xff]  ;;  %458 = vmatprep.mubr.f32.mxu0 %v884_v10  ;;  %529 = vmatprep.mubr.f32.mxu1 %v884_v10  ;;  %v886_v15 = vmov 0  }
  0x15   :  { %702 = vrot.lane.b32.xlu1 %v701_v3, %s877_s24  ;;  %692 = vrot.lane.b32.xlu0 %v701_v3, %s878_s25  ;;  %v696_v5 = vpack.i.bf16 %v928_v4, %v924_v2  ;;  %s883_s29 = smov 92   ;;  %s885_s30 = smov 90   ;;  %v761_v11 = vpack.i.bf16 %v30_v6, %v34_v7  ;;  %v756_v12 = vpack.i.bf16 %v949_v9, %v947_v8  ;;  %v384_v16 = vld [vmem:[%s1154_s2] sm:$0xff]  ;;  %vm50_vm0 = vcmask 1039360  }
  0x16   :  { %v816_v13 = vpack.i.bf16 %v947_v8, %v928_v4  ;;  %v821_v14 = vpack.i.bf16 %v34_v7, %v949_v9  ;;  %826 = vset.pattern.permute.xlu1 %v886_v15  ;;  %827 = vset.pattern.permute.xlu0 %v886_v15  ;;  %vm68_vm1 = vcmask 1031168   ;;  %vm86_vm2 = vcmask 900096  }
  0x17   :  { %vm104_vm3 = vcmask 891904   ;;  %vm122_vm4 = vcmask 883712   ;;  %vm158_vm5 = vcmask 744448   ;;  %vm140_vm6 = vcmask 752640  }
  0x18   :  { %vm176_vm7 = vcmask 736256   ;;  %vm390_vm8 = vcmask 588800  }
  0x19   :  { %707 = vrot.lane.b32.xlu1 %v701_v3, %s879_s0  ;;  %697 = vrot.lane.b32.xlu0 %v696_v5, %s878_s25 }
  0x1d   :  { %717 = vrot.lane.b32.xlu1 %v696_v5, %s879_s0  ;;  %712 = vrot.lane.b32.xlu0 %v696_v5, %s877_s24 }
  0x21   :  { %727 = vrot.lane.b32.xlu1 %v701_v3, %s880_s26  ;;  %722 = vrot.lane.b32.xlu0 %v701_v3, %s881_s27 }
  0x25   :  { %737 = vrot.lane.b32.xlu1 %v696_v5, %s880_s26  ;;  %732 = vrot.lane.b32.xlu0 %v696_v5, %s881_s27 }
  0x29   :  { %747 = vrot.lane.b32.xlu1 %v701_v3, %s882_s28  ;;  %742 = vrot.lane.b32.xlu0 %v701_v3, %s883_s29 }
  0x2d   :  { %150 = vrot.lane.b32.xlu1 %v924_v2, %s882_s28  ;;  %752 = vrot.lane.b32.xlu0 %v696_v5, %s883_s29 }
  0x31   :  { %172 = vrot.lane.b32.xlu1 %v922_v1, %s885_s30  ;;  %170 = vrot.lane.b32.xlu0 %v920_v0, %s885_s30 }
  0x35   :  { %762 = vrot.lane.b32.xlu1 %v761_v11, %s878_s25  ;;  %757 = vrot.lane.b32.xlu0 %v756_v12, %s878_s25 }
  0x39   :  { %767 = vrot.lane.b32.xlu1 %v756_v12, %s877_s24  ;;  %168 = vrot.lane.b32.xlu0 %v924_v2, %s885_s30 }
  0x3d   :  { %777 = vrot.lane.b32.xlu1 %v756_v12, %s879_s0  ;;  %772 = vrot.lane.b32.xlu0 %v761_v11, %s877_s24 }
  0x41   :  { %787 = vrot.lane.b32.xlu1 %v756_v12, %s881_s27  ;;  %782 = vrot.lane.b32.xlu0 %v761_v11, %s879_s0 }
  0x45   :  { %797 = vrot.lane.b32.xlu1 %v756_v12, %s880_s26  ;;  %792 = vrot.lane.b32.xlu0 %v761_v11, %s881_s27 }
  0x49   :  { %807 = vrot.lane.b32.xlu1 %v756_v12, %s883_s29  ;;  %802 = vrot.lane.b32.xlu0 %v761_v11, %s880_s26 }
  0x4d   :  { %817 = vrot.lane.b32.xlu1 %v816_v13, %s882_s28  ;;  %812 = vrot.lane.b32.xlu0 %v761_v11, %s883_s29 }
  0x51   :  { %156 = vrot.lane.b32.xlu1 %v30_v6, %s882_s28  ;;  %822 = vrot.lane.b32.xlu0 %v821_v14, %s882_s28 }
  0x55   :  { %314 = vrot.lane.b32.xlu1 %v947_v8, %s885_s30  ;;  %312 = vrot.lane.b32.xlu0 %v928_v4, %s885_s30 }
  0x59   :  { %318 = vrot.lane.b32.xlu1 %v34_v7, %s885_s30  ;;  %316 = vrot.lane.b32.xlu0 %v949_v9, %s885_s30 }
  0x5d   :  { %174 = vrot.lane.b32.xlu0 %v30_v6, %s885_s30  ;;  %387 = vperm.xlu1 %826, %v384_v16  }
  0x87   :  { %v990_v17 = vpop.permute.xlu1 %702  ;;  %v992_v18 = vpop.permute.xlu0 %692 }
  0x88   :  { %v705_v19 = vunpack.i.h.bf16 %v990_v17  ;;  %v704_v20 = vunpack.i.l.bf16 %v990_v17  ;;  %v695_v21 = vunpack.i.h.bf16 %v992_v18  ;;  %v694_v22 = vunpack.i.l.bf16 %v992_v18  ;;  %v1084_v18 = vld [vmem:[%s1153_s1] sm:$0xff]  ;;  %s887_s1 = smov [#allocation6]  }
  0x89   :  { %s619_s7 = sshll.u32 %s887_s1, 4  ;;  %s620_s7 = int_to_ptr.vmem [resolvable:$true] %s619_s7 }
  0x8a   :  { %v52_v23 = vsel %vm50_vm0, %v694_v22, %v695_v21  ;;  %v70_v30 = vsel %vm68_vm1, %v704_v20, %v705_v19  ;;  %s850_s8 = scalar_lea.vmem %s620_s7, 768  ;;  %p855_p9 = scmp.lt.s32.totalorder %s620_s7, %s620_s7 }
  0x8b   :  { %v1001_v24 = vpop.permute.xlu1 %707  ;;  %v1003_v25 = vpop.permute.xlu0 %697  ;;  %v631_v26 = vpack.c.bf16 %v52_v23, %v920_v0  ;;  %p851_p8 = scmp.ne.s32.totalorder %s620_s7, %s850_s8  ;;  %p856_p10 = scmp.lt.s32.totalorder %s850_s8, %s850_s8 }
  0x8c   :  { %v710_v27 = vunpack.i.h.bf16 %v1001_v24  ;;  %v709_v28 = vunpack.i.l.bf16 %v1001_v24  ;;  %v699_v29 = vunpack.i.l.bf16 %v1003_v25 }
  0x8d   :  { %632 = vmatprep.subr.bf16.mxu0 %v631_v26  ;;  %p857_p11 = por %p856_p10, %p855_p9 }
  0x8e   :  { %v51_v31 = vsel %vm50_vm0, %v699_v29, %v694_v22  ;;  %v88_v32 = vsel %vm86_vm2, %v709_v28, %v710_v27 }
  0x8f   :  { %v1016_v33 = vpop.permute.xlu1 %717  ;;  %v1018_v34 = vpop.permute.xlu0 %712  ;;  %v633_v35 = vpack.c.bf16 %v51_v31, %v924_v2  ;;  %v635_v36 = vpack.c.bf16 %v88_v32, %v70_v30  ;;  %p858_p12 = pnand %p857_p11, %p851_p8 }
  0x90   :  { %v719_v37 = vunpack.i.l.bf16 %v1016_v33  ;;  %v714_v38 = vunpack.i.l.bf16 %v1018_v34 }
  0x91   :  { %634 = vmatpush1.bf16.msra.mxu0 %v633_v35 }
  0x92   :  { %636 = vmatprep.subr.bf16.mxu0 %v635_v36  ;;  %v69_v39 = vsel %vm68_vm1, %v714_v38, %v704_v20  ;;  %v87_v40 = vsel %vm86_vm2, %v719_v37, %v709_v28  ;;  %v700_v20 = vunpack.i.h.bf16 %v1003_v25 }
  0x93   :  { %v1025_v41 = vpop.permute.xlu1 %727  ;;  %v1027_v42 = vpop.permute.xlu0 %722  ;;  %v637_v43 = vpack.c.bf16 %v87_v40, %v69_v39 }
  0x94   :  { %v730_v44 = vunpack.i.h.bf16 %v1025_v41  ;;  %v729_v45 = vunpack.i.l.bf16 %v1025_v41  ;;  %v725_v46 = vunpack.i.h.bf16 %v1027_v42  ;;  %v724_v47 = vunpack.i.l.bf16 %v1027_v42 }
  0x95   :  { %638 = vmatpush1.bf16.msra.mxu0 %v637_v43 }
  0x96   :  { %v106_v48 = vsel %vm104_vm3, %v724_v47, %v725_v46  ;;  %v124_v49 = vsel %vm122_vm4, %v729_v45, %v730_v44 }
  0x97   :  { %v1039_v50 = vpop.permute.xlu1 %737  ;;  %v1041_v51 = vpop.permute.xlu0 %732  ;;  %v639_v52 = vpack.c.bf16 %v124_v49, %v106_v48 }
  0x98   :  { %v739_v53 = vunpack.i.l.bf16 %v1039_v50  ;;  %v734_v54 = vunpack.i.l.bf16 %v1041_v51 }
  0x99   :  { %640 = vmatprep.subr.bf16.mxu0 %v639_v52 }
  0x9a   :  { %v105_v55 = vsel %vm104_vm3, %v734_v54, %v724_v47  ;;  %v123_v56 = vsel %vm122_vm4, %v739_v53, %v729_v45 }
  0x9b   :  { %v1047_v57 = vpop.permute.xlu1 %747  ;;  %v1049_v58 = vpop.permute.xlu0 %742  ;;  %v641_v59 = vpack.c.bf16 %v123_v56, %v105_v55 }
  0x9c   :  { %v750_v60 = vunpack.i.h.bf16 %v1047_v57  ;;  %v749_v61 = vunpack.i.l.bf16 %v1047_v57  ;;  %v745_v62 = vunpack.i.h.bf16 %v1049_v58  ;;  %v744_v63 = vunpack.i.l.bf16 %v1049_v58 }
  0x9d   :  { %642 = vmatpush1.bf16.msra.mxu0 %v641_v59 }
  0x9e   :  { %v142_v0 = vsel %vm140_vm6, %v744_v63, %v745_v62  ;;  %v160_v2 = vsel %vm158_vm5, %v749_v61, %v750_v60 }
  0x9f   :  { %v151_v3 = vpop.permute.xlu1 %150  ;;  %v1061_v5 = vpop.permute.xlu0 %752  ;;  %v643_v6 = vpack.c.bf16 %v160_v2, %v142_v0 }
  0xa0   :  { %v159_v7 = vsel %vm158_vm5, %v151_v3, %v749_v61  ;;  %v754_v11 = vunpack.i.l.bf16 %v1061_v5 }
  0xa1   :  { %644 = vmatprep.subr.bf16.mxu0 %v643_v6 }
  0xa2   :  { %v141_v12 = vsel %vm140_vm6, %v754_v11, %v744_v63 }
  0xa3   :  { %v1066_v13 = vpop.permute.xlu1 %172  ;;  %v171_v14 = vpop.permute.xlu0 %170  ;;  %v645_v15 = vpack.c.bf16 %v159_v7, %v141_v12 }
  0xa4   :  { %v178_v16 = vsel %vm176_vm7, %v171_v14, %v1066_v13 }
  0xa5   :  { %646 = vmatpush1.bf16.msra.mxu0 %v645_v15 }
  0xa6   :  { %410 = vmatprep.subr.mxu0 %v178_v16  ;;  %v740_v16 = vunpack.i.h.bf16 %v1039_v50 }
  0xa7   :  { %v763_v22 = vpop.permute.xlu1 %762  ;;  %v758_v23 = vpop.permute.xlu0 %757 }
  0xa8   :  { %v765_v26 = vunpack.i.h.bf16 %v763_v22  ;;  %v764_v28 = vunpack.i.l.bf16 %v763_v22  ;;  %v760_v29 = vunpack.i.h.bf16 %v758_v23  ;;  %v759_v30 = vunpack.i.l.bf16 %v758_v23 }
  0xaa   :  { %v201_v31 = vsel %vm50_vm0, %v700_v20, %v759_v30  ;;  %v53_v32 = vsel %vm50_vm0, %v695_v21, %v765_v26  ;;  %v203_v35 = vsel %vm50_vm0, %v760_v29, %v764_v28  ;;  %v202_v36 = vsel %vm50_vm0, %v759_v30, %v760_v29 }
  0xab   :  { %v768_v37 = vpop.permute.xlu1 %767  ;;  %v169_v38 = vpop.permute.xlu0 %168  ;;  %v647_v25 = vpack.c.bf16 %v201_v31, %v928_v4  ;;  %v649_v39 = vpack.c.bf16 %v53_v32, %v922_v1  ;;  %v663_v40 = vpack.c.bf16 %v203_v35, %v949_v9  ;;  %v665_v21 = vpack.c.bf16 %v202_v36, %v947_v8 }
  0xac   :  { %v177_v43 = vsel %vm176_vm7, %v169_v38, %v171_v14  ;;  %v769_v45 = vunpack.i.l.bf16 %v768_v37  ;;  %v720_v1 = vunpack.i.h.bf16 %v1016_v33  ;;  %v715_v9 = vunpack.i.h.bf16 %v1018_v34 }
  0xad   :  { %411 = vmatpush1.msra.mxu0 %v177_v43  ;;  %648 = vmatprep.subr.bf16.mxu1 %v647_v25  ;;  %v770_v49 = vunpack.i.h.bf16 %v768_v37  ;;  %v735_v20 = vunpack.i.h.bf16 %v1041_v51 }
  0xae   :  { %650 = vmatpush1.bf16.msra.mxu1 %v649_v39  ;;  %664 = vmatprep.subr.bf16.mxu0 %v663_v40  ;;  %v218_v54 = vsel %vm68_vm1, %v715_v9, %v769_v45  ;;  %v755_v40 = vunpack.i.h.bf16 %v1061_v5 }
  0xaf   :  { %v778_v4 = vpop.permute.xlu1 %777  ;;  %v773_v47 = vpop.permute.xlu0 %772  ;;  %628 = vmatmul.mubr.msk.f32.vlgmr.msra.gmra.mrb[0].mxu0 %vm390_vm8, %v1084_v18  ;;  %v219_v33 = vsel %vm68_vm1, %v769_v45, %v770_v49 }
  0xb0   :  { %v779_v48 = vunpack.i.l.bf16 %v778_v4  ;;  %666 = vmatpush1.bf16.msra.mxu0 %v665_v21  ;;  %600 = vmatprep.mubr.f32.mxu0 %v884_v10  ;;  %v780_v52 = vunpack.i.h.bf16 %v778_v4  ;;  %v775_v53 = vunpack.i.h.bf16 %v773_v47  ;;  %v774_v8 = vunpack.i.l.bf16 %v773_v47 }
  0xb2   :  { %v235_v55 = vsel %vm86_vm2, %v720_v1, %v779_v48  ;;  %v236_v34 = vsel %vm86_vm2, %v779_v48, %v780_v52  ;;  %v71_v10 = vsel %vm68_vm1, %v705_v19, %v775_v53  ;;  %v220_v6 = vsel %vm68_vm1, %v770_v49, %v774_v8 }
  0xb3   :  { %v788_v56 = vpop.permute.xlu1 %787  ;;  %v783_v59 = vpop.permute.xlu0 %782  ;;  %v651_v61 = vpack.c.bf16 %v235_v55, %v218_v54  ;;  %v669_v17 = vpack.c.bf16 %v236_v34, %v219_v33 }
  0xb4   :  { %v785_v63 = vunpack.i.h.bf16 %v783_v59  ;;  %v784_v0 = vunpack.i.l.bf16 %v783_v59  ;;  %v789_v2 = vunpack.i.l.bf16 %v788_v56  ;;  %v790_v19 = vunpack.i.h.bf16 %v788_v56 }
  0xb5   :  { %652 = vmatprep.subr.bf16.mxu1 %v651_v61 }
  0xb6   :  { %v89_v3 = vsel %vm86_vm2, %v710_v27, %v785_v63  ;;  %v237_v7 = vsel %vm86_vm2, %v780_v52, %v784_v0  ;;  %v252_v27 = vsel %vm104_vm3, %v735_v20, %v789_v2  ;;  %v253_v51 = vsel %vm104_vm3, %v789_v2, %v790_v19 }
  0xb7   :  { %v798_v11 = vpop.permute.xlu1 %797  ;;  %v793_v12 = vpop.permute.xlu0 %792  ;;  %v653_v14 = vpack.c.bf16 %v89_v3, %v71_v10  ;;  %v667_v15 = vpack.c.bf16 %v237_v7, %v220_v6 }
  0xb8   :  { %v799_v22 = vunpack.i.l.bf16 %v798_v11  ;;  %v800_v23 = vunpack.i.h.bf16 %v798_v11  ;;  %v795_v26 = vunpack.i.h.bf16 %v793_v12  ;;  %v794_v24 = vunpack.i.l.bf16 %v793_v12 }
  0xb9   :  { %654 = vmatpush1.bf16.msra.mxu1 %v653_v14  ;;  %668 = vmatprep.subr.bf16.mxu0 %v667_v15 }
  0xba   :  { %670 = vmatpush1.bf16.msra.mxu0 %v669_v17  ;;  %v269_v28 = vsel %vm122_vm4, %v740_v16, %v799_v22  ;;  %v270_v35 = vsel %vm122_vm4, %v799_v22, %v800_v23  ;;  %v107_v36 = vsel %vm104_vm3, %v725_v46, %v795_v26  ;;  %v254_v25 = vsel %vm104_vm3, %v790_v19, %v794_v24 }
  0xbb   :  { %v808_v29 = vpop.permute.xlu1 %807  ;;  %v803_v30 = vpop.permute.xlu0 %802  ;;  %v655_v31 = vpack.c.bf16 %v269_v28, %v252_v27  ;;  %v673_v47 = vpack.c.bf16 %v270_v35, %v253_v51 }
  0xbc   :  { %v805_v32 = vunpack.i.h.bf16 %v803_v30  ;;  %v804_v50 = vunpack.i.l.bf16 %v803_v30  ;;  %v809_v37 = vunpack.i.l.bf16 %v808_v29  ;;  %v810_v46 = vunpack.i.h.bf16 %v808_v29 }
  0xbd   :  { %656 = vmatprep.subr.bf16.mxu1 %v655_v31 }
  0xbe   :  { %v125_v38 = vsel %vm122_vm4, %v730_v44, %v805_v32  ;;  %v271_v39 = vsel %vm122_vm4, %v800_v23, %v804_v50  ;;  %v286_v44 = vsel %vm140_vm6, %v755_v40, %v809_v37  ;;  %v287_v59 = vsel %vm140_vm6, %v809_v37, %v810_v46 }
  0xbf   :  { %v818_v43 = vpop.permute.xlu1 %817  ;;  %v813_v21 = vpop.permute.xlu0 %812  ;;  %v657_v45 = vpack.c.bf16 %v125_v38, %v107_v36  ;;  %v671_v4 = vpack.c.bf16 %v271_v39, %v254_v25 }
  0xc0   :  { %v820_v1 = vunpack.i.h.bf16 %v818_v43  ;;  %v819_v42 = vunpack.i.l.bf16 %v818_v43  ;;  %v815_v9 = vunpack.i.h.bf16 %v813_v21  ;;  %v814_v41 = vunpack.i.l.bf16 %v813_v21 }
  0xc1   :  { %658 = vmatpush1.bf16.msra.mxu1 %v657_v45  ;;  %672 = vmatprep.subr.bf16.mxu0 %v671_v4 }
  0xc2   :  { %674 = vmatpush1.bf16.msra.mxu0 %v673_v47  ;;  %v303_v48 = vsel %vm158_vm5, %v819_v42, %v820_v1  ;;  %v143_v53 = vsel %vm140_vm6, %v745_v62, %v815_v9  ;;  %v288_v63 = vsel %vm140_vm6, %v810_v46, %v814_v41 }
  0xc3   :  { %v157_v49 = vpop.permute.xlu1 %156  ;;  %v823_v52 = vpop.permute.xlu0 %822  ;;  %v659_v5 = vpack.c.bf16 %v303_v48, %v286_v44 }
  0xc4   :  { %v161_v8 = vsel %vm158_vm5, %v750_v60, %v157_v49  ;;  %v825_v54 = vunpack.i.h.bf16 %v823_v52  ;;  %v824_v55 = vunpack.i.l.bf16 %v823_v52 }
  0xc5   :  { %v661_v56 = vpack.c.bf16 %v161_v8, %v143_v53  ;;  %660 = vmatprep.subr.bf16.mxu1 %v659_v5 }
  0xc6   :  { %v304_v61 = vsel %vm158_vm5, %v820_v1, %v824_v55  ;;  %v305_v0 = vsel %vm158_vm5, %v824_v55, %v825_v54 }
  0xc7   :  { %v677_v33 = vpack.c.bf16 %v304_v61, %v287_v59  ;;  %v315_v58 = vpop.permute.xlu1 %314  ;;  %v313_v34 = vpop.permute.xlu0 %312  ;;  %662 = vmatpush1.bf16.msra.mxu1 %v661_v56  ;;  %v675_v62 = vpack.c.bf16 %v305_v0, %v288_v63 }
  0xc8   :  { %v320_v57 = vsel %vm176_vm7, %v313_v34, %v315_v58 }
  0xc9   :  { %481 = vmatprep.subr.mxu1 %v320_v57  ;;  %676 = vmatprep.subr.bf16.mxu0 %v675_v62 }
  0xca   :  { %678 = vmatpush1.bf16.msra.mxu0 %v677_v33 }
  0xcb   :  { %v319_v60 = vpop.permute.xlu1 %318  ;;  %v317_v10 = vpop.permute.xlu0 %316 }
  0xcc   :  { %v321_v2 = vsel %vm176_vm7, %v315_v58, %v317_v10  ;;  %v322_v3 = vsel %vm176_vm7, %v317_v10, %v319_v60 }
  0xcd   :  { %552 = vmatprep.subr.mxu0 %v322_v3 }
  0xce   :  { %553 = vmatpush1.msra.mxu0 %v321_v2 }
  0xcf   :  { %v175_v6 = vpop.permute.xlu0 %174  ;;  %630 = vmatmul.mubr.msk.f32.vlgmr.msra.gmra.mrb[2].mxu0 %vm390_vm8, %v1084_v18 }
  0xd0   :  { %v179_v7 = vsel %vm176_vm7, %v1066_v13, %v175_v6 }
  0xd1   :  { %482 = vmatpush1.msra.mxu1 %v179_v7 }
  0xd2   :  { %629 = vmatmul.mubr.msk.f32.vlgmr.msra.gmra.mrb[0].mxu1 %vm390_vm8, %v1084_v18 }
  0xdc   :  { %v388_v11 = vpop.permute.xlu1 %387 }
 0x182   :  { %v460_v12 = vpop.f32.mrb[0].mxu0 }
 0x183   :  { %v461_v14 = vadd.f32 %v460_v12, %v388_v11  ;;  %v462_v15 = vpop.f32.mrb[1].mxu0 }
 0x184   :  { %v463_v16 = vadd.f32 %v462_v15, %v388_v11 }
 0x185   :  { %607 = vst [vmem:[#allocation6] sm:$0xff] %v461_v14 }
 0x186   :  { %608 = vst [vmem:[#allocation6 + $0x8] sm:$0xff] %v463_v16 }
 0x1a2   :  { %v602_v20 = vpop.f32.mrb[2].mxu0 }
 0x1a3   :  { %v603_v17 = vadd.f32 %v602_v20, %v388_v11  ;;  %v604_v22 = vpop.f32.mrb[3].mxu0 }
 0x1a4   :  { %v605_v19 = vadd.f32 %v604_v22, %v388_v11 }
 0x1a5   :  { %611 = vst [vmem:[#allocation6 + $0x20] sm:$0xff] %v603_v17  ;;  %v531_v23 = vpop.f32.mrb[0].mxu1 }
 0x1a6   :  { %v532_v13 = vadd.f32 %v531_v23, %v388_v11  ;;  %612 = vst [vmem:[#allocation6 + $0x28] sm:$0xff] %v605_v19  ;;  %v533_v26 = vpop.f32.mrb[1].mxu1 }
 0x1a7   :  { %v534_v24 = vadd.f32 %v533_v26, %v388_v11 }
 0x1a8   :  { %609 = vst [vmem:[#allocation6 + $0x10] sm:$0xff] %v532_v13 }
 0x1a9   :  { %610 = vst [vmem:[#allocation6 + $0x18] sm:$0xff] %v534_v24 }
 0x1aa   :  { %861 = shalt.err (!%p858_p12)
}
 0x1ab   :  { %s862_s11 = scalar_lea.hbm %s1155_s3, 768 }
 0x1ac   :  { %p863_p13 = scmp.ne.s32.totalorder %s1155_s3, %s862_s11  ;;  %p866_p0 = scmp.lt.u32.totalorder %s862_s11, %s1155_s3 }
 0x1ae   :  { %p868_p1 = pnand %p866_p0, %p863_p13 }
 0x1b0   :  { %871 = shalt.err (!%p868_p1)
}
 0x1b1   :  { %622 = dma.vmem_to_hbm [thread:$0]  %s620_s7, 768, %s1155_s3, [#allocation5]  }
 0x1b2   :  { %874 = dma.done.wait [#allocation5], 768  }
 0x1b3   :  { %875 = vsyncadd [#allocation5], 4294966528 }
 0x1b4   :  { %626 = vsyncpa [#allocation4], 1 }
 0x1b5   :  { %627 = vsyncpa [#allocation5], 1 }

</bundles_post_ra>
